<compile_context>
chip_gen: v5e
topology: v5e:2x2
jax: 0.10.0
libtpu: 0.0.40
codegen_flags: <defaults>
</compile_context>

<pallas_src>
import functools

import jax
import jax.numpy as jnp
from jax.experimental import pallas as pl
from jax.experimental.pallas import tpu as pltpu


_LANE = 128                    # TPU lane width
_SMALL_THRESHOLD = 64 * 1024   # output elements below which plain XLA wins
_MIB = 1024 * 1024


def _round_up(x, m):
    return (x + m - 1) // m * m


def _shape_layer_kernel(params_ref, comp_ref, out_ref):
    # params_ref: (TN, C+1)  f32, last column is ones
    # comp_ref:   (C+1, TP)  components_dtype, last row is the mean
    # out_ref:    (TN, TP)
    a = params_ref[...]
    b = comp_ref[...]
    if b.dtype != jnp.float32:
        # Match dtypes so the MXU takes its narrow (bf16 / fp8) path;
        # accumulation stays f32 so accuracy is unaffected (K = C+1 is tiny).
        a = a.astype(b.dtype)
    out_ref[...] = jnp.dot(
        a, b, preferred_element_type=jnp.float32
    ).astype(out_ref.dtype)


@functools.lru_cache(maxsize=None)
def _vmem_budget_bytes():
    """Generation-aware VMEM budget used for tile sizing."""
    try:
        cap = int(pltpu.get_tpu_info().vmem_capacity_bytes)
    except Exception:                      # interpret mode / non-TPU backend
        cap = 64 * _MIB
    if cap >= 96 * _MIB:                   # v5e / v6e: 128 MiB per core
        return min(3 * cap // 4, 100 * _MIB)
    return min(7 * cap // 16, 28 * _MIB)   # v7x: 64 MiB physical per TC


def _choose_tiles(N, K, PD, comp_isz, out_isz, params_isz=4):
    budget = _vmem_budget_bytes()

    # PD tile: multiple of 128 (lane-dense stores except the final tail tile);
    # the double-buffered comp tile gets at most ~1/4 of the budget.
    if PD < _LANE:
        TP = PD                                          # full extent
    else:
        tp_cap = budget // (4 * 2 * K * comp_isz)
        tp_cap = max(_LANE, (tp_cap // _LANE) * _LANE)
        TP = min((PD // _LANE) * _LANE, tp_cap, 8192)

    # N tile: the double-buffered output tile gets at most ~1/2 of the budget;
    # keep the tile count even & balanced so v7x's two TCs split evenly.
    tn_cap = budget // (2 * 2 * TP * out_isz)
    tn_cap = min(max(8, (tn_cap // 8) * 8), 4096)
    if N <= 16:
        TN = N                                           # full extent
    elif N <= tn_cap:
        TN = _round_up(-(-N // 2), 8)                    # two balanced tiles
    else:
        n_tiles = -(-N // tn_cap)
        n_tiles += n_tiles % 2                           # even count for 2 TCs
        TN = min(_round_up(-(-N // n_tiles), 8), tn_cap)

    est = 2 * (TN * K * params_isz + K * TP * comp_isz + TN * TP * out_isz)
    vmem_limit = int(min(max(est * 5 // 4 + 2 * _MIB, 16 * _MIB),
                         budget + 8 * _MIB))
    return TN, TP, vmem_limit


class ShapeLayer:
    """JAX / Pallas-TPU port of shapenet's _ShapeLayerPy.

    out[n, p, d] = mean[p, d] + sum_c shape_params[n, c] * components[c, p, d]
    """

    def __init__(self, shapes, *, components_dtype=jnp.bfloat16,
                 out_dtype=jnp.float32):
        # shapes: (C+1, P, D); shapes[0] = mean, shapes[1:] = eigen components
        shapes = jnp.asarray(shapes, jnp.float32)
        self._C = int(shapes.shape[0]) - 1
        self._P, self._D = int(shapes.shape[1]), int(shapes.shape[2])
        pd = self._P * self._D
        mean = shapes[0].reshape(1, pd)
        comps = shapes[1:].reshape(self._C, pd)
        # Mean folded into the matmul (ones column on params / mean row here).
        # Built ONCE at init so the per-call path never concat/cast/pads the
        # big component matrix again (it is the dominant HBM stream).
        self._comp_aug = jax.device_put(
            jnp.concatenate([comps, mean], axis=0).astype(components_dtype))
        self._out_dtype = out_dtype
        # TODO(synk): on v7x, components_dtype=jnp.float8_e4m3fn would halve the
        # comp HBM read again; untested on pre-v7x MXUs, so bf16 is the default.

    @property
    def num_params(self):
        return self._C

    def __call__(self, shape_params, *, force_pallas=False):
        if shape_params.ndim == 4:                     # (N, C, 1, 1) torch-style
            shape_params = shape_params.reshape(shape_params.shape[0],
                                                shape_params.shape[1])
        N, C = shape_params.shape
        assert C == self._C, f"expected {self._C} shape params, got {C}"
        PD = self._P * self._D
        K = C + 1

        params_aug = jnp.concatenate(                  # (N, C+1) f32 — tiny
            [shape_params.astype(jnp.float32), jnp.ones((N, 1), jnp.float32)],
            axis=1)
        comp = self._comp_aug

        if not force_pallas and N * PD <= _SMALL_THRESHOLD:
            # Launch-overhead dominated regime: plain XLA wins.  Uses the SAME
            # precomputed buffer / dtype so numerics match the Pallas path.
            a = (params_aug if comp.dtype == jnp.float32
                 else params_aug.astype(comp.dtype))
            out = jnp.dot(a, comp, preferred_element_type=jnp.float32)
            return out.astype(self._out_dtype).reshape(N, self._P, self._D)

        TN, TP, vmem_limit = _choose_tiles(
            N, K, PD, comp.dtype.itemsize, jnp.dtype(self._out_dtype).itemsize)

        # Grid order: PD outer, N inner -> the comp block index depends only on
        # the outer axis and stays VMEM-resident across the whole inner N sweep
        # (1x HBM read of the component matrix per PD tile).
        grid = (pl.cdiv(PD, TP), pl.cdiv(N, TN))

        out = pl.pallas_call(
            _shape_layer_kernel,
            out_shape=jax.ShapeDtypeStruct((N, PD), self._out_dtype),
            grid=grid,
            in_specs=[
                pl.BlockSpec((TN, K), lambda p, n: (n, 0)),
                pl.BlockSpec((K, TP), lambda p, n: (0, p)),
            ],
            out_specs=pl.BlockSpec((TN, TP), lambda p, n: (n, p)),
            compiler_params=pltpu.CompilerParams(
                dimension_semantics=("parallel", "parallel"),
                vmem_limit_bytes=vmem_limit,
            ),
        )(params_aug, comp)
        # No PD padding and no post-kernel slice: ragged edges are handled by
        # Pallas' masked boundary blocks (no extra HBM round trip of the output).
        return out.reshape(N, self._P, self._D)


if __name__ == "__main__":
    key = jax.random.PRNGKey(0)
    k_shapes, k_p1, k_p2, k_shapes2, k_p3 = jax.random.split(key, 5)

    # Small deterministic synthetic "PCA" shape model (as in the torch module:
    # shapes[0] = mean, shapes[1:] = eigen components).
    N, C, P, D = 2, 4, 16, 2
    shapes = jax.random.normal(k_shapes, (C + 1, P, D), dtype=jnp.float32)
    shape_params = jax.random.normal(k_p1, (N, C, 1, 1), dtype=jnp.float32)

    def ref_fn(sp, shp, dtype=jnp.float32):
        sp2 = sp.reshape(sp.shape[0], sp.shape[1]).astype(dtype).astype(jnp.float32)
        mean = shp[0].astype(dtype).astype(jnp.float32)
        comps = shp[1:].astype(dtype).astype(jnp.float32)
        return mean[None] + jnp.einsum("nc,cpd->npd", sp2, comps)

    # 1) exact-precision layer, forced Pallas, tiny landmark-sized case.
    layer_f32 = ShapeLayer(shapes, components_dtype=jnp.float32)
    out = jax.block_until_ready(layer_f32(shape_params, force_pallas=True))
    ref = ref_fn(shape_params, shapes)
    assert out.shape == (N, P, D)
    assert jnp.allclose(out, ref, atol=1e-5, rtol=1e-5)
    assert layer_f32.num_params == C

    # 2) auto-dispatch path (XLA fast path at this tiny size), same buffer.
    out_fast = jax.block_until_ready(layer_f32(shape_params))
    assert jnp.allclose(out_fast, ref, atol=1e-5, rtol=1e-5)

    # 3) larger batch: balanced N tiles (152/148) incl. a partial final block.
    N_big = 300
    sp_big = jax.random.normal(k_p2, (N_big, C, 1, 1), dtype=jnp.float32)
    out_big = jax.block_until_ready(layer_f32(sp_big, force_pallas=True))
    assert out_big.shape == (N_big, P, D)
    assert jnp.allclose(out_big, ref_fn(sp_big, shapes), atol=1e-4, rtol=1e-4)

    # 4) PD > 128: exercises the PD grid axis with a masked tail tile.
    P2, D2, N2 = 80, 2, 40                       # PD = 160 -> tiles 128 + 32
    shapes2 = jax.random.normal(k_shapes2, (C + 1, P2, D2), dtype=jnp.float32)
    sp2 = jax.random.normal(k_p3, (N2, C), dtype=jnp.float32)   # (N, C) input
    layer2 = ShapeLayer(shapes2, components_dtype=jnp.float32)
    out2 = jax.block_until_ready(layer2(sp2, force_pallas=True))
    assert out2.shape == (N2, P2, D2)
    assert jnp.allclose(out2, ref_fn(sp2, shapes2), atol=1e-4, rtol=1e-4)

    # 5) default bf16 components (halves the dominant HBM read); compare
    #    against a bf16-rounded reference.
    layer_bf16 = ShapeLayer(shapes)              # components_dtype=bf16 default
    out_bf = jax.block_until_ready(layer_bf16(sp_big, force_pallas=True))
    ref_bf = ref_fn(sp_big, shapes, dtype=jnp.bfloat16)
    assert jnp.allclose(out_bf, ref_bf, atol=1e-3, rtol=1e-3)

    print("KERNEL_OK")
</pallas_src>

<mosaic_0001>
module attributes {stable_mosaic.version = 11 : i64} {
  func.func @_shape_layer_kernel(%arg0: i32, %arg1: i32, %arg2: memref<2x5xf32, #tpu.memory_space<vmem>>, %arg3: memref<5x32xf32, #tpu.memory_space<vmem>>, %arg4: memref<2x32xf32, #tpu.memory_space<vmem>>) attributes {dimension_semantics = [#tpu.dimension_semantics<parallel>, #tpu.dimension_semantics<parallel>], iteration_bounds = array<i64: 1, 1>, scalar_prefetch = 0 : i64, scratch_operands = 0 : i64, tpu.core_type = #tpu.core_type<tc>, window_params = [{transform_indices = @transform_0, window_bounds = array<i64: 2, 5>}, {transform_indices = @transform_1, window_bounds = array<i64: 5, 32>}, {transform_indices = @transform_2, window_bounds = array<i64: 2, 32>}]} {
    %c0 = arith.constant 0 : index
    %c0_0 = arith.constant 0 : index
    %0 = vector.load %arg2[%c0, %c0_0] : memref<2x5xf32, #tpu.memory_space<vmem>>, vector<2x5xf32>
    %c0_1 = arith.constant 0 : index
    %c0_2 = arith.constant 0 : index
    %1 = vector.load %arg3[%c0_1, %c0_2] : memref<5x32xf32, #tpu.memory_space<vmem>>, vector<5x32xf32>
    %cst = arith.constant dense<0.000000e+00> : vector<2x32xf32>
    %2 = tpu.matmul %0, %1, %cst {dimension_numbers = #tpu.dot_dimension_numbers<[1], [0], [0], [1], [0, 0, 1, 1], [], []>} : vector<2x5xf32>, vector<5x32xf32>, vector<2x32xf32> -> vector<2x32xf32>
    %c0_3 = arith.constant 0 : index
    %c0_4 = arith.constant 0 : index
    %3 = vector.load %arg4[%c0_3, %c0_4] : memref<2x32xf32, #tpu.memory_space<vmem>>, vector<2x32xf32>
    tpu.vector_store %arg4[%c0_3, %c0_4], %2 {strides = array<i32>} : memref<2x32xf32, #tpu.memory_space<vmem>>, vector<2x32xf32>,
    return
  }
  func.func @transform_0(%arg0: i32, %arg1: i32) -> (i32, i32) {
    %c0_i32 = arith.constant 0 : i32
    %c0_i32_0 = arith.constant 0 : i32
    return %arg1, %c0_i32 : i32, i32
  }
  func.func @transform_1(%arg0: i32, %arg1: i32) -> (i32, i32) {
    %c0_i32 = arith.constant 0 : i32
    %c0_i32_0 = arith.constant 0 : i32
    return %c0_i32, %arg0 : i32, i32
  }
  func.func @transform_2(%arg0: i32, %arg1: i32) -> (i32, i32) {
    %c0_i32 = arith.constant 0 : i32
    return %arg1, %arg0 : i32, i32
  }
}

</mosaic_0001>

<bundles_post_ra>
// kernel: tpu_custom_call.1
= control target key start
LH: loop header
LB: loop body
LE: loop exit
PB: predicated region body
PF: predicated region fallthrough
CT: control target
= control target key end

     0   :  { %7 = vsyncpa [#allocation3], 0  ;;  %s200_s0 = inlined_call_operand.hbm [shape: f32[2,5], index: 0, kind: input, shape index: {}]   ;;  %s201_s1 = inlined_call_operand.hbm [shape: f32[5,32], index: 1, kind: input, shape index: {}]   ;;  %s202_s2 = inlined_call_operand.hbm [shape: f32[2,32], index: 2, kind: output, shape index: {}]  }
   0x1   :  { %8 = vsyncpa [#allocation6], 0 }
   0x2   :  { %9 = vsyncpa [#allocation4], 0  ;;  %s15_s11 = sshll.u32 %s200_s0, 4  ;;  %s173_s12 = smov [#allocation2]   ;;  %s16_s11 = int_to_ptr.hbm [resolvable:$true] %s15_s11 }
   0x3   :  { %s17_s13 = sshll.u32 %s173_s12, 4  ;;  %s26_s16 = sshll.u32 %s201_s1, 4  ;;  %s18_s13 = int_to_ptr.vmem [resolvable:$true] %s17_s13  ;;  %s27_s16 = int_to_ptr.hbm [resolvable:$true] %s26_s16 }
   0x4   :  { %20 = dma.hbm_to_vmem [thread:$0]  %s16_s11, 32, %s18_s13, [#allocation3]  }
   0x5   :  { %s174_s17 = smov [#allocation5]  }
   0x6   :  { %s28_s18 = sshll.u32 %s174_s17, 4  ;;  %s29_s18 = int_to_ptr.vmem [resolvable:$true] %s28_s18 }
   0x7   :  { %31 = dma.hbm_to_vmem [thread:$0]  %s27_s16, 128, %s29_s18, [#allocation6]  }
   0x8   :  { %167 = dma.done.wait [#allocation3], 32  }
   0x9   :  { %168 = vsyncadd [#allocation3], 4294967264 }
   0xa   :  { %169 = dma.done.wait [#allocation6], 128  }
   0xb   :  { %170 = vsyncadd [#allocation6], 4294967168  ;;  %vm46_vm0 = vcmask 1044480   ;;  %vm42_vm1 = vcmask 39936   ;;  %v41_v0 = vld [vmem:[#allocation5] sm:$0x1f] }
   0xc   :  { %v40_v1 = vld [vmem:[#allocation2] sm:$0x3]  ;;  %90 = vmatpush.msk.msra.mxu0 %vm46_vm0, %v41_v0  ;;  %s175_s0 = smov [#allocation7]   ;;  %s79_s21 = sshll.u32 %s202_s2, 4  ;;  %vm70_vm2 = vcmask 254976   ;;  %s80_s21 = int_to_ptr.hbm [resolvable:$true] %s79_s21 }
   0xd   :  { %91 = vmatmul.msk.f32.vlgmr.msra.gmra.mxu0 %vm42_vm1, %v40_v1  ;;  %s77_s19 = sshll.u32 %s175_s0, 4  ;;  %s78_s19 = int_to_ptr.vmem [resolvable:$true] %s77_s19 }
  0x8a   :  { %v67_v2 = vpop.f32.mrf.mxu0 }
  0x8b   :  { %71 = vst.msk [vmem:[#allocation7] sm:$0x3] %vm70_vm2, %v67_v2 }
  0x8c   :  { %82 = dma.vmem_to_hbm [thread:$0]  %s78_s19, 32, %s80_s21, [#allocation4]  }
  0x8d   :  { %171 = dma.done.wait [#allocation4], 32  }
  0x8e   :  { %172 = vsyncadd [#allocation4], 4294967264 }
  0x8f   :  { %87 = vsyncpa [#allocation3], 1 }
  0x90   :  { %88 = vsyncpa [#allocation6], 1 }
  0x91   :  { %89 = vsyncpa [#allocation4], 1 }

</bundles_post_ra>
